<compile_context>
chip_gen: v7x
topology: tpu7x:2x2x1
jax: 0.10.0
libtpu: 0.0.40
codegen_flags: <defaults>
</compile_context>

<pallas_src>
import jax
import jax.numpy as jnp
from jax.experimental import pallas as pl
from jax.experimental.pallas import tpu as pltpu


def _critic_kernel(obs_t_ref, act_t_ref, w1t_ref, b1w2_ref, b2_ref, out_ref, x_scratch):
    # obs_t_ref : (obs_dim, TB)   act_t_ref : (n_acts, TB)     -- batch on lanes
    # w1t_ref   : (n_hidden, obs_dim + n_acts)                 -- PyTorch layout
    # b1w2_ref  : (n_hidden, 2)   col 0 = b1, col 1 = w2
    # b2_ref    : (1,) scalar in SMEM
    # out_ref   : (1, TB)                                      -- lane-dense
    # x_scratch : (obs_dim + n_acts, TB) VMEM staging buffer
    obs_dim = obs_t_ref.shape[0]
    n_acts = act_t_ref.shape[0]

    # Stage obs/actions next to each other (in-VMEM copies, no HBM concat),
    # then a single MXU push: (n_hidden, K) @ (K, TB) -> (n_hidden, TB).
    x_scratch[0:obs_dim, :] = obs_t_ref[...]
    x_scratch[obs_dim:obs_dim + n_acts, :] = act_t_ref[...]
    h = jnp.dot(w1t_ref[...], x_scratch[...], preferred_element_type=jnp.float32)

    h = h + b1w2_ref[:, 0:1]          # bias column broadcasts over the lanes (batch)
    h = jnp.maximum(h, 0.0)           # ReLU (VPU)

    # Second linear has output width 1: VPU mul + sublane (XLU) reduce instead
    # of an M=1 MXU matmul.
    w2_col = b1w2_ref[:, 1:2]         # (n_hidden, 1)
    out = jnp.sum(h * w2_col, axis=0, keepdims=True) + b2_ref[0]   # (1, TB)
    out_ref[...] = out.astype(out_ref.dtype)


def _batch_tile(B: int) -> int:
    """Lane-dense batch tile: a multiple of 128, capped at 2048, and <= ~B/2
    whenever B > 128 so the parallel batch axis yields >= 2 grid steps
    (lets v7x shard across both TensorCores)."""
    if B <= 128:
        return 128
    half = -(-B // 2)                  # ceil(B / 2)
    tb = -(-half // 128) * 128         # round up to a multiple of 128
    return min(tb, 2048)


def critic_forward(obs, actions, params):
    """obs: (B, obs_dim), actions: (B, n_acts) -> (B, 1)"""
    w1_t = params["w1_t"]          # (n_hidden, obs_dim + n_acts)
    b1_w2 = params["b1_w2"]        # (n_hidden, 2)
    b2 = params["b2"]              # (1,)

    B, obs_dim = obs.shape
    n_acts = actions.shape[1]
    n_hidden = w1_t.shape[0]
    in1 = obs_dim + n_acts

    tb = _batch_tile(B)
    grid_n = -(-B // tb)           # ceil(B / tb)
    Bp = grid_n * tb

    # Transpose once (batch -> lane axis) and zero-pad lanes up to a tile
    # multiple; padded columns are sliced off after the kernel.
    obs_t = jnp.pad(obs.T, ((0, 0), (0, Bp - B)))
    act_t = jnp.pad(actions.T, ((0, 0), (0, Bp - B)))

    flops = 2 * Bp * in1 * n_hidden + 4 * Bp * n_hidden
    bytes_accessed = 4 * (Bp * in1 + n_hidden * in1 + n_hidden * 2 + 1 + Bp)

    out = pl.pallas_call(
        _critic_kernel,
        out_shape=jax.ShapeDtypeStruct((1, Bp), jnp.float32),
        grid_spec=pltpu.PrefetchScalarGridSpec(
            num_scalar_prefetch=0,
            grid=(grid_n,),
            in_specs=[
                pl.BlockSpec((obs_dim, tb), lambda i: (0, i)),        # obs^T tile
                pl.BlockSpec((n_acts, tb), lambda i: (0, i)),         # actions^T tile
                pl.BlockSpec((n_hidden, in1), lambda i: (0, 0)),      # w1 (resident)
                pl.BlockSpec((n_hidden, 2), lambda i: (0, 0)),        # [b1 | w2] (resident)
                pl.BlockSpec(memory_space=pltpu.MemorySpace.SMEM),    # b2 scalar
            ],
            out_specs=pl.BlockSpec((1, tb), lambda i: (0, i)),        # lane-dense output
            scratch_shapes=[pltpu.VMEM((in1, tb), jnp.float32)],      # fused-x staging
        ),
        compiler_params=pltpu.CompilerParams(
            dimension_semantics=("parallel",),   # batch tiles independent (megacore on v7x)
        ),
        cost_estimate=pl.CostEstimate(
            flops=flops, transcendentals=0, bytes_accessed=bytes_accessed),
    )(obs_t, act_t, w1_t, b1_w2, b2)

    return out[0, :B].reshape(B, 1)


def init_critic_params(key, obs_dim, n_acts, n_hidden):
    """Deterministic parameter init (PyTorch-Linear-like uniform bounds).

    Kernel layout (fixed once at init, not in the hot path):
      w1_t : (n_hidden, obs_dim + n_acts)   -- native nn.Linear weight layout
      b1_w2: (n_hidden, 2)  col 0 = b1, col 1 = w2 (squeezed)
      b2   : (1,) scalar
    """
    in1 = obs_dim + n_acts
    k1, k2, k3, k4 = jax.random.split(key, 4)
    bound1 = 1.0 / jnp.sqrt(in1)
    bound2 = 1.0 / jnp.sqrt(n_hidden)

    w1_t = jax.random.uniform(k1, (n_hidden, in1), jnp.float32, -bound1, bound1)
    b1 = jax.random.uniform(k2, (n_hidden,), jnp.float32, -bound1, bound1)
    w2 = jax.random.uniform(k3, (n_hidden,), jnp.float32, -bound2, bound2)
    b2 = jax.random.uniform(k4, (1,), jnp.float32, -bound2, bound2)

    return {
        "w1_t": w1_t,
        "b1_w2": jnp.stack([b1, w2], axis=1),   # (n_hidden, 2)
        "b2": b2,
    }


if __name__ == "__main__":
    obs_dim, n_acts, n_hidden = 16, 4, 32
    batch = 8

    key = jax.random.PRNGKey(0)
    k_params, k_obs, k_act = jax.random.split(key, 3)

    params = init_critic_params(k_params, obs_dim, n_acts, n_hidden)
    obs = jax.random.normal(k_obs, (batch, obs_dim), jnp.float32)
    actions = jax.random.normal(k_act, (batch, n_acts), jnp.float32)

    out = critic_forward(obs, actions, params)
    out = jax.block_until_ready(out)

    # sanity check against a pure-JAX reference of the same math
    x = jnp.concatenate([obs, actions], axis=1)            # (B, in1)
    w1_t = params["w1_t"]
    b1 = params["b1_w2"][:, 0]
    w2 = params["b1_w2"][:, 1]
    ref = jnp.maximum(x @ w1_t.T + b1, 0.0) @ w2.reshape(-1, 1) + params["b2"]

    assert out.shape == (batch, 1)
    assert jnp.allclose(out, ref, atol=1e-5, rtol=1e-5)

    print("KERNEL_OK")
</pallas_src>

<mosaic_0001>
module attributes {stable_mosaic.version = 11 : i64} {
  func.func @_critic_kernel(%arg0: i32, %arg1: memref<16x128xf32, #tpu.memory_space<vmem>>, %arg2: memref<4x128xf32, #tpu.memory_space<vmem>>, %arg3: memref<32x20xf32, #tpu.memory_space<vmem>>, %arg4: memref<32x2xf32, #tpu.memory_space<vmem>>, %arg5: memref<1xf32, #tpu.memory_space<smem>>, %arg6: memref<1x128xf32, #tpu.memory_space<vmem>>, %arg7: memref<20x128xf32, #tpu.memory_space<vmem>>) attributes {dimension_semantics = [#tpu.dimension_semantics<parallel>], iteration_bounds = array<i64: 1>, scalar_prefetch = 0 : i64, scratch_operands = 1 : i64, tpu.core_type = #tpu.core_type<tc>, window_params = [{transform_indices = @transform_0, window_bounds = array<i64: 16, 128>}, {transform_indices = @transform_1, window_bounds = array<i64: 4, 128>}, {pipeline_mode = #tpu.pipeline_mode<synchronous>, transform_indices = @transform_2, window_bounds = array<i64: 32, 20>}, {pipeline_mode = #tpu.pipeline_mode<synchronous>, transform_indices = @transform_3, window_bounds = array<i64: 32, 2>}, {transform_indices = @transform_4, window_bounds = array<i64: 1>}, {transform_indices = @transform_5, window_bounds = array<i64: 1, 128>}]} {
    %c0 = arith.constant 0 : index
    %c0_0 = arith.constant 0 : index
    %0 = vector.load %arg1[%c0, %c0_0] : memref<16x128xf32, #tpu.memory_space<vmem>>, vector<16x128xf32>
    %c0_1 = arith.constant 0 : index
    %c0_2 = arith.constant 0 : index
    %1 = vector.load %arg7[%c0_1, %c0_2] : memref<20x128xf32, #tpu.memory_space<vmem>>, vector<16x128xf32>
    tpu.vector_store %arg7[%c0_1, %c0_2], %0 {strides = array<i32>} : memref<20x128xf32, #tpu.memory_space<vmem>>, vector<16x128xf32>,
    %c0_3 = arith.constant 0 : index
    %c0_4 = arith.constant 0 : index
    %2 = vector.load %arg2[%c0_3, %c0_4] : memref<4x128xf32, #tpu.memory_space<vmem>>, vector<4x128xf32>
    %c16 = arith.constant 16 : index
    %c0_5 = arith.constant 0 : index
    %3 = vector.load %arg7[%c16, %c0_5] : memref<20x128xf32, #tpu.memory_space<vmem>>, vector<4x128xf32>
    tpu.vector_store %arg7[%c16, %c0_5], %2 {strides = array<i32>} : memref<20x128xf32, #tpu.memory_space<vmem>>, vector<4x128xf32>,
    %c0_6 = arith.constant 0 : index
    %c0_7 = arith.constant 0 : index
    %4 = vector.load %arg3[%c0_6, %c0_7] : memref<32x20xf32, #tpu.memory_space<vmem>>, vector<32x20xf32>
    %c0_8 = arith.constant 0 : index
    %c0_9 = arith.constant 0 : index
    %5 = vector.load %arg7[%c0_8, %c0_9] : memref<20x128xf32, #tpu.memory_space<vmem>>, vector<20x128xf32>
    %cst = arith.constant dense<0.000000e+00> : vector<32x128xf32>
    %6 = tpu.matmul %4, %5, %cst {dimension_numbers = #tpu.dot_dimension_numbers<[1], [0], [0], [1], [0, 0, 1, 1], [], []>} : vector<32x20xf32>, vector<20x128xf32>, vector<32x128xf32> -> vector<32x128xf32>
    %c0_10 = arith.constant 0 : index
    %c0_11 = arith.constant 0 : index
    %7 = vector.load %arg4[%c0_10, %c0_11] : memref<32x2xf32, #tpu.memory_space<vmem>>, vector<32x1xf32>
    %8 = vector.broadcast %7 : vector<32x1xf32> to vector<32x128xf32>
    %9 = arith.addf %6, %8 : vector<32x128xf32>
    %cst_12 = arith.constant 0.000000e+00 : f32
    %10 = vector.broadcast %cst_12 : f32 to vector<32x128xf32>
    %11 = arith.maximumf %9, %10 : vector<32x128xf32>
    %c0_13 = arith.constant 0 : index
    %c1 = arith.constant 1 : index
    %12 = vector.load %arg4[%c0_13, %c1] : memref<32x2xf32, #tpu.memory_space<vmem>>, vector<32x1xf32>
    %13 = vector.broadcast %12 : vector<32x1xf32> to vector<32x128xf32>
    %14 = arith.mulf %11, %13 : vector<32x128xf32>
    %cst_14 = arith.constant dense<0.000000e+00> : vector<128xf32>
    %15 = vector.multi_reduction <add>, %14, %cst_14 [0] : vector<32x128xf32> to vector<128xf32>
    %16 = vector.shape_cast %15 : vector<128xf32> to vector<1x128xf32>
    %c0_15 = arith.constant 0 : index
    %17 = memref.load %arg5[%c0_15] : memref<1xf32, #tpu.memory_space<smem>>
    %18 = vector.broadcast %17 : f32 to vector<1x128xf32>
    %19 = arith.addf %16, %18 : vector<1x128xf32>
    %c0_16 = arith.constant 0 : index
    %c0_17 = arith.constant 0 : index
    %20 = vector.load %arg6[%c0_16, %c0_17] : memref<1x128xf32, #tpu.memory_space<vmem>>, vector<1x128xf32>
    tpu.vector_store %arg6[%c0_16, %c0_17], %19 {strides = array<i32>} : memref<1x128xf32, #tpu.memory_space<vmem>>, vector<1x128xf32>,
    return
  }
  func.func @transform_0(%arg0: i32) -> (i32, i32) {
    %c0_i32 = arith.constant 0 : i32
    %c0_i32_0 = arith.constant 0 : i32
    return %c0_i32, %arg0 : i32, i32
  }
  func.func @transform_1(%arg0: i32) -> (i32, i32) {
    %c0_i32 = arith.constant 0 : i32
    %c0_i32_0 = arith.constant 0 : i32
    return %c0_i32, %arg0 : i32, i32
  }
  func.func @transform_2(%arg0: i32) -> (i32, i32) {
    %c0_i32 = arith.constant 0 : i32
    %c0_i32_0 = arith.constant 0 : i32
    %c0_i32_1 = arith.constant 0 : i32
    return %c0_i32, %c0_i32_0 : i32, i32
  }
  func.func @transform_3(%arg0: i32) -> (i32, i32) {
    %c0_i32 = arith.constant 0 : i32
    %c0_i32_0 = arith.constant 0 : i32
    %c0_i32_1 = arith.constant 0 : i32
    return %c0_i32, %c0_i32_0 : i32, i32
  }
  func.func @transform_4(%arg0: i32) -> i32 {
    %c0_i32 = arith.constant 0 : i32
    %c0_i32_0 = arith.constant 0 : i32
    return %c0_i32 : i32
  }
  func.func @transform_5(%arg0: i32) -> (i32, i32) {
    %c0_i32 = arith.constant 0 : i32
    %c0_i32_0 = arith.constant 0 : i32
    return %c0_i32, %arg0 : i32, i32
  }
}

</mosaic_0001>

<bundles_post_ra>
// kernel: tpu_custom_call.1
= control target key start
LH: loop header
LB: loop body
LE: loop exit
PB: predicated region body
PF: predicated region fallthrough
CT: control target
= control target key end

     0   :  { %vm59_vm0 = vcmask 162816   ;;  %s360_s0 = inlined_call_operand.vmem [shape: f32[16,128], index: 0, kind: input, shape index: {}]   ;;  %s361_s1 = inlined_call_operand.vmem [shape: f32[4,128], index: 1, kind: input, shape index: {}]   ;;  %s362_s2 = inlined_call_operand.vmem [shape: f32[32,20], index: 2, kind: input, shape index: {}]   ;;  %s363_s3 = inlined_call_operand.vmem [shape: f32[32,2], index: 3, kind: input, shape index: {}]   ;;  %s364_s4 = inlined_call_operand.<no memory space> [shape: f32[1], index: 4, kind: input, shape index: {}]   ;;  %s365_s5 = inlined_call_operand.hbm [shape: f32[1,128], index: 5, kind: output, shape index: {}]  }
   0x1   :  { %v22_v0 = vld [vmem:[%s360_s0] sm:$0xff]  ;;  %v23_v1 = vld [vmem:[%s360_s0 + $0x8] sm:$0xff]  ;;  %v30_v5 = vld [vmem:[%s362_s2 + $0x10] sm:$0xff] }
   0x2   :  { %v26_v2 = vld [vmem:[%s361_s1] sm:$0xf]  ;;  %v236_v3 = vpack.c.bf16 %v23_v1, %v22_v0  ;;  %233 = vmatprep.mubr.msk.f32.mxu1 %vm59_vm0, %v30_v5  ;;  %v37_v6 = vld [vmem:[%s363_s3 + $0x10] sm:$0xff] }
   0x3   :  { %27 = vst [vmem:[#allocation2 + $0x10] sm:$0xf] %v26_v2  ;;  %v28_v4 = vld [vmem:[%s362_s2] sm:$0xff] }
   0x4   :  { %230 = vmatprep.mubr.msk.f32.mxu0 %vm59_vm0, %v28_v4  ;;  %237 = vmatprep.subr.bf16.mxu0 %v236_v3  ;;  %v35_v7 = vld [vmem:[%s363_s3] sm:$0xff] }
   0x5   :  { %240 = vmatprep.subr.bf16.mxu1 %v236_v3 }
   0x6   :  { %11 = vsyncpa [#allocation5], 0  ;;  %239 = vmatpush3.bf16.msra.mxu0 %v236_v3  ;;  %242 = vmatpush3.bf16.msra.mxu1 %v236_v3  ;;  %v275_v8 = vmov 0   ;;  %vm72_vm1 = vcmask 1043456   ;;  %v29_v10 = vld [vmem:[%s362_s2 + $0x8] sm:$0xff]  ;;  %v31_v11 = vld [vmem:[%s362_s2 + $0x18] sm:$0xff]  ;;  %v195_v47 = vstv %s364_s4 }
   0x7   :  { %248 = vset.pattern.permute.xlu1 %v275_v8  ;;  %247 = vset.pattern.permute.xlu0 %v275_v8  ;;  %v38_v12 = vld [vmem:[%s363_s3 + $0x18] sm:$0xff]  ;;  %v36_v13 = vld [vmem:[%s363_s3 + $0x8] sm:$0xff]  ;;  %v276_v14 = vmov 1   ;;  %s277_s13 = smov [#allocation4]  }
   0x8   :  { %51 = vperm.xlu1 %248, %v37_v6   ;;  %41 = vperm.xlu0 %247, %v35_v7   ;;  %s204_s14 = sshll.u32 %s277_s13, 4  ;;  %s205_s14 = int_to_ptr.vmem [resolvable:$true] %s204_s14 }
   0x9   :  { %s251_s15 = scalar_lea.vmem %s205_s14, 16  ;;  %s255_s16 = scalar_lea.vmem %s205_s14, 32 }
   0xa   :  { %v34_v9 = vld [vmem:[#allocation2 + $0x10] sm:$0xf]  ;;  %p252_p0 = scmp.ne.s32.totalorder %s205_s14, %s251_s15  ;;  %p256_p1 = scmp.lt.s32.totalorder %s205_s14, %s205_s14 }
   0xb   :  { %228 = vmatprep.subr.msk.mxu0 %vm72_vm1, %v34_v9  ;;  %241 = vmatprep.subr.msk.mxu1 %vm72_vm1, %v34_v9  ;;  %p257_p2 = scmp.lt.s32.totalorder %s255_s16, %s251_s15 }
   0xc   :  { %229 = vmatpush3.msk.msra.mxu0 %vm72_vm1, %v34_v9  ;;  %243 = vmatpush3.msk.msra.mxu1 %vm72_vm1, %v34_v9 }
   0xd   :  { %231 = vmatmul.mubr.msk.f32.vlgmr.msra.gmra.mrb[0].mxu0 %vm59_vm0, %v29_v10  ;;  %234 = vmatmul.mubr.msk.f32.vlgmr.msra.gmra.mrb[0].mxu1 %vm59_vm0, %v31_v11  ;;  %p258_p3 = por %p257_p2, %p256_p1 }
   0xe   :  { %56 = vperm.xlu1 %248, %v38_v12   ;;  %46 = vperm.xlu0 %247, %v36_v13  }
   0xf   :  { %p259_p4 = pnand %p258_p3, %p252_p0 }
  0x12   :  { %250 = vset.pattern.permute.xlu1 %v276_v14  ;;  %249 = vset.pattern.permute.xlu0 %v276_v14 }
  0x13   :  { %170 = vperm.xlu1 %250, %v36_v13   ;;  %166 = vperm.xlu0 %249, %v35_v7  }
  0x17   :  { %174 = vperm.xlu1 %250, %v37_v6   ;;  %178 = vperm.xlu0 %249, %v38_v12  }
  0x87   :  { %v52_v15 = vpop.permute.xlu1 %51  ;;  %v42_v16 = vpop.permute.xlu0 %41 }
  0x8d   :  { %v57_v17 = vpop.permute.xlu1 %56  ;;  %v47_v18 = vpop.permute.xlu0 %46 }
  0x92   :  { %v171_v19 = vpop.permute.xlu1 %170  ;;  %v167_v20 = vpop.permute.xlu0 %166 }
  0x96   :  { %v175_v35 = vpop.permute.xlu1 %174  ;;  %v179_v36 = vpop.permute.xlu0 %178 }
  0xe0   :  { %v232_v21 = vpop.f32.mrb[0].mxu0  ;;  %v235_v22 = vpop.f32.mrb[0].mxu1 }
  0xe1   :  { %v148_v23 = vadd.f32 %v232_v21, %v47_v18  ;;  %v142_v24 = vpop.f32.mrb[1].mxu0  ;;  %v152_v25 = vpop.f32.mrb[1].mxu1  ;;  %v158_v26 = vadd.f32 %v235_v22, %v57_v17 }
  0xe2   :  { %v143_v27 = vadd.f32 %v142_v24, %v42_v16  ;;  %v153_v28 = vadd.f32 %v152_v25, %v52_v15 }
  0xe3   :  { %v162_v29 = vmax.f32 %v148_v23, 0.0  ;;  %v164_v33 = vmax.f32 %v158_v26, 0.0 }
  0xe4   :  { %v161_v30 = vmax.f32 %v143_v27, 0.0  ;;  %v163_v31 = vmax.f32 %v153_v28, 0.0 }
  0xe5   :  { %v182_v32 = vmul.f32 %v171_v19, %v162_v29  ;;  %v184_v40 = vmul.f32 %v179_v36, %v164_v33 }
  0xe6   :  { %v181_v34 = vmul.f32 %v167_v20, %v161_v30  ;;  %v183_v37 = vmul.f32 %v175_v35, %v163_v31 }
  0xe8   :  { %v185_v38 = vadd.f32 %v182_v32, %v181_v34 }
  0xea   :  { %v186_v39 = vadd.f32 %v185_v38, %v183_v37 }
  0xec   :  { %v187_v41 = vadd.f32 %v186_v39, %v184_v40 }
  0xee   :  { %v188_v42 = vrot.slane %v187_v41, 4 }
  0xf0   :  { %v189_v43 = vadd.f32 %v188_v42, %v187_v41 }
  0xf2   :  { %v190_v44 = vrot.slane %v189_v43, 2 }
  0xf4   :  { %v191_v45 = vadd.f32 %v190_v44, %v189_v43 }
  0xf6   :  { %v192_v46 = vrot.slane %v191_v45, 1 }
  0xf8   :  { %v193_v48 = vadd.f32 %v192_v46, %v191_v45 }
  0xfa   :  { %v196_v49 = vadd.f32 %v195_v47, %v193_v48 }
  0xfc   :  { %197 = vst [vmem:[#allocation4] sm:$0x1] %v196_v49 }
  0xfd   :  { %262 = shalt.err (!%p259_p4)
}
  0xfe   :  { %s263_s19 = scalar_lea.hbm %s365_s5, 16 }
  0xff   :  { %p264_p5 = scmp.ne.s32.totalorder %s365_s5, %s263_s19  ;;  %p267_p6 = scmp.lt.u32.totalorder %s263_s19, %s365_s5 }
 0x101   :  { %p269_p7 = pnand %p267_p6, %p264_p5 }
 0x103   :  { %272 = shalt.err (!%p269_p7)
}
 0x104   :  { %207 = dma.vmem_to_hbm [thread:$0]  %s205_s14, 16, %s365_s5, [#allocation5]  }
 0x105   :  { %273 = dma.done.wait [#allocation5], 16  }
 0x106   :  { %274 = vsyncadd [#allocation5], 4294967280 }
 0x107   :  { %211 = vsyncpa [#allocation5], 1 }

</bundles_post_ra>
